<compile_context>
chip_gen: v6e
topology: v6e:2x2x1
jax: 0.10.0
libtpu: 0.0.40
codegen_flags: <defaults>
</compile_context>

<pallas_src>
import jax
import jax.numpy as jnp
from jax.experimental import pallas as pl
from jax.experimental.pallas import tpu as pltpu


def _largest_divisor_leq(n, cap):
    cap = max(1, min(n, int(cap)))
    for d in range(cap, 0, -1):
        if n % d == 0:
            return d
    return 1


def _linear_kernel(x_ref, w_ref, b_ref, o_ref):
    # x_ref: (Bt*S, Ct)  -- Bt batches, time-major rows, Ct lane-dense channels
    # w_ref: (P, S)      -- resident (constant index_map)
    # b_ref: (P, 1)      -- resident
    # o_ref: (Bt*P, Ct)
    P, S = w_ref.shape
    BtS, Ct = x_ref.shape
    Bt = BtS // S

    x = x_ref[...].astype(jnp.float32).reshape(Bt, S, Ct)    # view as (Bt,S,Ct)

    # Per-(batch, channel) stats over time (torch: mean / var(unbiased=False)
    # over dim=1).
    mean = jnp.mean(x, axis=1, keepdims=True)                 # (Bt, 1, Ct)
    xc = x - mean                                             # (Bt, S, Ct)
    var = jnp.mean(xc * xc, axis=1, keepdims=True)            # ddof=0
    stdev = jnp.sqrt(var + 1e-5)                              # (Bt, 1, Ct)

    # Normalize/de-normalize cancel:
    #   (W @ ((x-mean)/std) + b) * std + mean == W @ (x-mean) + b*std + mean
    out = jnp.einsum("ps,bsc->bpc", w_ref[...].astype(jnp.float32), xc,
                     preferred_element_type=jnp.float32)      # (Bt, P, Ct)
    out = out + b_ref[...].astype(jnp.float32).reshape(1, P, 1) * stdev + mean
    o_ref[...] = out.reshape(Bt * P, Ct).astype(o_ref.dtype)


def linear_forward(x, w, b, *, target_block_bytes=2 * 1024 * 1024,
                   min_grid_steps=1, out_dtype=None):
    """x: (B, S, C), w: (P, S), b: (P,) -> (B, P, C).

    Layout is fused into the BlockSpecs: x is viewed as (B*S, C) and the output
    as (B*P, C) (both zero-copy reshapes); the 2-D grid tiles batches and
    channels.  `min_grid_steps>=2` is a v7x knob (two TensorCores); leave it at
    1 on v5e/v6e.
    """
    B, S, C = x.shape
    P = w.shape[0]
    out_dtype = x.dtype if out_dtype is None else out_dtype
    itemsize = x.dtype.itemsize

    # ---- channel tile: full C unless C is huge and 128-aligned --------------
    Ct = C
    if C % 128 == 0 and S * C * itemsize > target_block_bytes:
        cap_lanes = max(128, (target_block_bytes // (S * itemsize)) // 128 * 128)
        d = 128
        Ct = 128
        while d <= min(C, cap_lanes):
            if C % d == 0:
                Ct = d
            d += 128

    # ---- batch tile: as many batches per step as fit the byte target --------
    bytes_per_batch = S * Ct * itemsize
    Bt = _largest_divisor_leq(B, max(1, target_block_bytes // bytes_per_batch))

    # v7x only: make sure the grid has enough steps for both TensorCores.
    while (B // Bt) * (C // Ct) < min_grid_steps and Bt > 1:
        Bt = _largest_divisor_leq(B, Bt - 1)

    # (8,128) rule: second-to-last block dims must be /8 or equal the full dim.
    if Bt != B and ((Bt * S) % 8 != 0 or (Bt * P) % 8 != 0):
        Bt = B

    x2 = x.reshape(B * S, C)                       # zero-copy view
    w2 = w.astype(jnp.float32)
    b2 = b.reshape(P, 1).astype(jnp.float32)

    out_flat = pl.pallas_call(
        _linear_kernel,
        out_shape=jax.ShapeDtypeStruct((B * P, C), out_dtype),
        grid_spec=pltpu.PrefetchScalarGridSpec(
            num_scalar_prefetch=0,
            grid=(B // Bt, C // Ct),
            in_specs=[
                pl.BlockSpec((Bt * S, Ct), lambda i, j: (i, j)),  # x (streams)
                pl.BlockSpec((P, S), lambda i, j: (0, 0)),        # W (resident)
                pl.BlockSpec((P, 1), lambda i, j: (0, 0)),        # bias (resident)
            ],
            out_specs=pl.BlockSpec((Bt * P, Ct), lambda i, j: (i, j)),
        ),
        compiler_params=pltpu.CompilerParams(
            # Both axes are independent; only matters on multi-TC parts (v7x).
            dimension_semantics=("parallel", "parallel"),
            vmem_limit_bytes=32 * 1024 * 1024,
        ),
    )(x2, w2, b2)

    return out_flat.reshape(B, P, C)               # zero-copy view


def reference_forward(x, w, b):
    """Pure-JAX reference mirroring the PyTorch forward exactly."""
    means = jnp.mean(x, axis=1, keepdims=True)
    xc = x - means
    stdev = jnp.sqrt(jnp.var(xc, axis=1, keepdims=True) + 1e-5)  # unbiased=False
    xn = xc / stdev
    xp = jnp.transpose(xn, (0, 2, 1))                  # (B, C, S)
    out = jnp.einsum("bcs,ps->bcp", xp, w) + b         # (B, C, P)
    out = jnp.transpose(out, (0, 2, 1))                # (B, P, C)
    return out * stdev + means                         # (B,1,C) broadcasts


if __name__ == "__main__":
    # Module config: Linear(seq_day=2, pred_day=1, cycle=8)
    seq_day, pred_day, cycle = 2, 1, 8
    seq_len = seq_day * cycle      # 16
    pred_len = pred_day * cycle    # 8
    B, C = 8, 128

    key = jax.random.PRNGKey(0)
    kx, kw, kb = jax.random.split(key, 3)

    x = jax.random.normal(kx, (B, seq_len, C), dtype=jnp.float32)
    # nn.Linear(seq_len, pred_len): weight (pred_len, seq_len), bias (pred_len,)
    bound = 1.0 / (seq_len ** 0.5)
    w = jax.random.uniform(kw, (pred_len, seq_len), jnp.float32, -bound, bound)
    b = jax.random.uniform(kb, (pred_len,), jnp.float32, -bound, bound)

    ref = reference_forward(x, w, b)

    # Default tiling: few large lane-dense steps, f32 end to end.
    out = jax.block_until_ready(linear_forward(x, w, b))
    assert out.shape == (B, pred_len, C)
    assert jnp.allclose(out, ref, atol=1e-4, rtol=1e-4), "default-tile mismatch"

    # Small block target + min_grid_steps=2: exercises the multi-step 2-D grid
    # (the v7x two-TensorCore configuration).
    out_t = jax.block_until_ready(
        linear_forward(x, w, b, target_block_bytes=16 * 1024, min_grid_steps=2))
    assert jnp.allclose(out_t, ref, atol=1e-4, rtol=1e-4), "tiled mismatch"

    # bf16-streamed activations (v5e HBM-bandwidth lever): the kernel upcasts
    # to f32 for stats/matmul; compare against the reference on the same
    # bf16-rounded input.
    x_bf = x.astype(jnp.bfloat16)
    ref_bf = reference_forward(x_bf.astype(jnp.float32), w, b)
    out_bf = jax.block_until_ready(
        linear_forward(x_bf, w, b, out_dtype=jnp.float32))
    assert jnp.allclose(out_bf, ref_bf, atol=1e-3, rtol=1e-3), "bf16 mismatch"

    print("KERNEL_OK")
</pallas_src>

<mosaic_0001>
module attributes {stable_mosaic.version = 11 : i64} {
  func.func @_linear_kernel(%arg0: i32, %arg1: i32, %arg2: memref<128x128xf32, #tpu.memory_space<vmem>>, %arg3: memref<8x16xf32, #tpu.memory_space<vmem>>, %arg4: memref<8x1xf32, #tpu.memory_space<vmem>>, %arg5: memref<64x128xf32, #tpu.memory_space<vmem>>) attributes {dimension_semantics = [#tpu.dimension_semantics<parallel>, #tpu.dimension_semantics<parallel>], iteration_bounds = array<i64: 1, 1>, scalar_prefetch = 0 : i64, scratch_operands = 0 : i64, tpu.core_type = #tpu.core_type<tc>, window_params = [{transform_indices = @transform_0, window_bounds = array<i64: 128, 128>}, {pipeline_mode = #tpu.pipeline_mode<synchronous>, transform_indices = @transform_1, window_bounds = array<i64: 8, 16>}, {pipeline_mode = #tpu.pipeline_mode<synchronous>, transform_indices = @transform_2, window_bounds = array<i64: 8, 1>}, {transform_indices = @transform_3, window_bounds = array<i64: 64, 128>}]} {
    %c0 = arith.constant 0 : index
    %c0_0 = arith.constant 0 : index
    %0 = vector.load %arg2[%c0, %c0_0] : memref<128x128xf32, #tpu.memory_space<vmem>>, vector<128x128xf32>
    %1 = vector.shape_cast %0 : vector<128x128xf32> to vector<8x16x128xf32>
    %cst = arith.constant dense<0.000000e+00> : vector<8x128xf32>
    %2 = vector.multi_reduction <add>, %1, %cst [1] : vector<8x16x128xf32> to vector<8x128xf32>
    %3 = vector.shape_cast %2 : vector<8x128xf32> to vector<8x1x128xf32>
    %cst_1 = arith.constant 1.600000e+01 : f32
    %4 = vector.broadcast %cst_1 : f32 to vector<8x1x128xf32>
    %5 = arith.divf %3, %4 : vector<8x1x128xf32>
    %6 = vector.broadcast %5 : vector<8x1x128xf32> to vector<8x16x128xf32>
    %7 = arith.subf %1, %6 : vector<8x16x128xf32>
    %8 = arith.mulf %7, %7 : vector<8x16x128xf32>
    %cst_2 = arith.constant dense<0.000000e+00> : vector<8x128xf32>
    %9 = vector.multi_reduction <add>, %8, %cst_2 [1] : vector<8x16x128xf32> to vector<8x128xf32>
    %10 = vector.shape_cast %9 : vector<8x128xf32> to vector<8x1x128xf32>
    %cst_3 = arith.constant 1.600000e+01 : f32
    %11 = vector.broadcast %cst_3 : f32 to vector<8x1x128xf32>
    %12 = arith.divf %10, %11 : vector<8x1x128xf32>
    %cst_4 = arith.constant 9.99999974E-6 : f32
    %13 = vector.broadcast %cst_4 : f32 to vector<8x1x128xf32>
    %14 = arith.addf %12, %13 : vector<8x1x128xf32>
    %15 = math.sqrt %14 : vector<8x1x128xf32>
    %c0_5 = arith.constant 0 : index
    %c0_6 = arith.constant 0 : index
    %16 = vector.load %arg3[%c0_5, %c0_6] : memref<8x16xf32, #tpu.memory_space<vmem>>, vector<8x16xf32>
    "tpu.trace_start"() <{level = 10 : i32, message = "ps,bsc->bpc"}> : () -> ()
    %cst_7 = arith.constant dense<0.000000e+00> : vector<8x128x8xf32>
    %17 = tpu.matmul %7, %16, %cst_7 {dimension_numbers = #tpu.dot_dimension_numbers<[1], [1], [0, 2], [0], [0, 0, 0, 2, 1, 0], [], []>} : vector<8x16x128xf32>, vector<8x16xf32>, vector<8x128x8xf32> -> vector<8x128x8xf32>
    %18 = tpu.transpose %17, [0, 2, 1] : vector<8x128x8xf32> -> vector<8x8x128xf32>
    "tpu.trace_stop"() : () -> ()
    %c0_8 = arith.constant 0 : index
    %c0_9 = arith.constant 0 : index
    %19 = vector.load %arg4[%c0_8, %c0_9] : memref<8x1xf32, #tpu.memory_space<vmem>>, vector<8x1xf32>
    %20 = vector.shape_cast %19 : vector<8x1xf32> to vector<1x8x1xf32>
    %21 = vector.broadcast %20 : vector<1x8x1xf32> to vector<8x8x128xf32>
    %22 = vector.broadcast %15 : vector<8x1x128xf32> to vector<8x8x128xf32>
    %23 = arith.mulf %21, %22 : vector<8x8x128xf32>
    %24 = arith.addf %18, %23 : vector<8x8x128xf32>
    %25 = vector.broadcast %5 : vector<8x1x128xf32> to vector<8x8x128xf32>
    %26 = arith.addf %24, %25 : vector<8x8x128xf32>
    %27 = vector.shape_cast %26 : vector<8x8x128xf32> to vector<64x128xf32>
    %c0_10 = arith.constant 0 : index
    %c0_11 = arith.constant 0 : index
    %28 = vector.load %arg5[%c0_10, %c0_11] : memref<64x128xf32, #tpu.memory_space<vmem>>, vector<64x128xf32>
    tpu.vector_store %arg5[%c0_10, %c0_11], %27 {strides = array<i32>} : memref<64x128xf32, #tpu.memory_space<vmem>>, vector<64x128xf32>,
    return
  }
  func.func @transform_0(%arg0: i32, %arg1: i32) -> (i32, i32) {
    %c0_i32 = arith.constant 0 : i32
    return %arg0, %arg1 : i32, i32
  }
  func.func @transform_1(%arg0: i32, %arg1: i32) -> (i32, i32) {
    %c0_i32 = arith.constant 0 : i32
    %c0_i32_0 = arith.constant 0 : i32
    %c0_i32_1 = arith.constant 0 : i32
    return %c0_i32, %c0_i32_0 : i32, i32
  }
  func.func @transform_2(%arg0: i32, %arg1: i32) -> (i32, i32) {
    %c0_i32 = arith.constant 0 : i32
    %c0_i32_0 = arith.constant 0 : i32
    %c0_i32_1 = arith.constant 0 : i32
    return %c0_i32, %c0_i32_0 : i32, i32
  }
  func.func @transform_3(%arg0: i32, %arg1: i32) -> (i32, i32) {
    %c0_i32 = arith.constant 0 : i32
    return %arg0, %arg1 : i32, i32
  }
}

</mosaic_0001>

<bundles_post_ra>
// kernel: tpu_custom_call.1
= control target key start
LH: loop header
LB: loop body
LE: loop exit
PB: predicated region body
PF: predicated region fallthrough
CT: control target
= control target key end

     0   :  { %8 = vsyncpa [#allocation3], 0  ;;  %s2871_s0 = inlined_call_operand.hbm [shape: f32[128,128], index: 0, kind: input, shape index: {}]   ;;  %s2872_s1 = inlined_call_operand.vmem [shape: f32[8,16], index: 1, kind: input, shape index: {}]   ;;  %s2873_s2 = inlined_call_operand.vmem [shape: f32[8,1], index: 2, kind: input, shape index: {}]   ;;  %s2874_s3 = inlined_call_operand.hbm [shape: f32[64,128], index: 3, kind: output, shape index: {}]  }
   0x1   :  { %9 = vsyncpa [#allocation4], 0  ;;  %s2453_s12 = smov [#allocation2]  }
   0x2   :  { %s15_s13 = sshll.u32 %s2453_s12, 4  ;;  %s16_s13 = int_to_ptr.vmem [resolvable:$true] %s15_s13 }
   0x3   :  { %s2417_s14 = scalar_lea.vmem %s16_s13, 2048  ;;  %p2422_p1 = scmp.lt.s32.totalorder %s16_s13, %s16_s13 }
   0x4   :  { %p2418_p0 = scmp.ne.s32.totalorder %s16_s13, %s2417_s14  ;;  %p2423_p2 = scmp.lt.s32.totalorder %s2417_s14, %s2417_s14 }
   0x6   :  { %p2424_p3 = por %p2423_p2, %p2422_p1 }
   0x8   :  { %p2425_p4 = pnand %p2424_p3, %p2418_p0 }
   0xa   :  { %2428 = shalt.err (!%p2425_p4)
}
   0xb   :  { %s2454_s15 = smov 128   ;;  %s2455_s16 = smov 8  }
   0xc   :  { %21 = dma.hbm_to_vmem [thread:$0]  %s2871_s0, 2048, %s16_s13, [#allocation3], %s2454_s15, %s2454_s15, %s2455_s16  }
   0xd   :  { %2449 = dma.done.wait [#allocation3], 2048  }
   0xe   :  { %2450 = vsyncadd [#allocation3], 4294965248  ;;  %v29_v0 = vld [vmem:[#allocation2] sm:$0xff]  ;;  %v30_v1 = vld [vmem:[#allocation2 + $0x8] sm:$0xff]  ;;  %vm527_vm0 = vcmask 130048  }
   0xf   :  { %v31_v2 = vld [vmem:[#allocation2 + $0x10] sm:$0xff]  ;;  %v45_v3 = vadd.f32 %v30_v1, %v29_v0  ;;  %v32_v4 = vld [vmem:[#allocation2 + $0x18] sm:$0xff]  ;;  %v33_v5 = vld [vmem:[#allocation2 + $0x20] sm:$0xff] }
  0x10   :  { %v34_v6 = vld [vmem:[#allocation2 + $0x28] sm:$0xff]  ;;  %v52_v7 = vadd.f32 %v32_v4, %v31_v2  ;;  %v35_v9 = vld [vmem:[#allocation2 + $0x30] sm:$0xff]  ;;  %v36_v10 = vld [vmem:[#allocation2 + $0x38] sm:$0xff] }
  0x11   :  { %v59_v8 = vadd.f32 %v34_v6, %v33_v5  ;;  %v46_v11 = vrot.slane %v45_v3, 4  ;;  %v66_v12 = vadd.f32 %v36_v10, %v35_v9  ;;  %v270_v37 = vld [vmem:[%s2872_s1] sm:$0xff]  ;;  %v38_v62 = vld [vmem:[#allocation2 + $0x48] sm:$0xff]  ;;  %v39_v63 = vld [vmem:[#allocation2 + $0x50] sm:$0xff] }
  0x12   :  { %v53_v13 = vrot.slane %v52_v7, 4  ;;  %2189 = vmatprep.subr.msk.mxu0 %vm527_vm0, %v270_v37  ;;  %2383 = vmatprep.subr.msk.mxu1 %vm527_vm0, %v270_v37  ;;  %v37_v61 = vld [vmem:[#allocation2 + $0x40] sm:$0xff] }
  0x13   :  { %v60_v14 = vrot.slane %v59_v8, 4  ;;  %v47_v15 = vadd.f32 %v46_v11, %v45_v3  ;;  %v67_v16 = vrot.slane %v66_v12, 4  ;;  %2190 = vmatpush3.xpose.msk.msra.mxu0 %vm527_vm0, %v270_v37  ;;  %2384 = vmatpush3.xpose.msk.msra.mxu1 %vm527_vm0, %v270_v37 }
  0x14   :  { %v54_v17 = vadd.f32 %v53_v13, %v52_v7  ;;  %v41_v13 = vld [vmem:[#allocation2 + $0x60] sm:$0xff] }
  0x15   :  { %v61_v18 = vadd.f32 %v60_v14, %v59_v8  ;;  %v48_v19 = vrot.slane %v47_v15, 2  ;;  %v68_v20 = vadd.f32 %v67_v16, %v66_v12  ;;  %v42_v14 = vld [vmem:[#allocation2 + $0x68] sm:$0xff] }
  0x16   :  { %v55_v21 = vrot.slane %v54_v17, 2 }
  0x17   :  { %v62_v22 = vrot.slane %v61_v18, 2  ;;  %v49_v23 = vadd.f32 %v48_v19, %v47_v15  ;;  %v69_v24 = vrot.slane %v68_v20, 2  ;;  %v87_v15 = vadd.f32 %v42_v14, %v41_v13 }
  0x18   :  { %v56_v25 = vadd.f32 %v55_v21, %v54_v17 }
  0x19   :  { %v63_v26 = vadd.f32 %v62_v22, %v61_v18  ;;  %v50_v27 = vrot.slane %v49_v23, 1  ;;  %v70_v28 = vadd.f32 %v69_v24, %v68_v20  ;;  %v88_v17 = vrot.slane %v87_v15, 4 }
  0x1a   :  { %v57_v29 = vrot.slane %v56_v25, 1 }
  0x1b   :  { %v64_v30 = vrot.slane %v63_v26, 1  ;;  %v51_v31 = vadd.f32 %v50_v27, %v49_v23  ;;  %v71_v32 = vrot.slane %v70_v28, 1  ;;  %v89_v19 = vadd.f32 %v88_v17, %v87_v15 }
  0x1c   :  { %v58_v33 = vadd.f32 %v57_v29, %v56_v25 }
  0x1d   :  { %v65_v34 = vadd.f32 %v64_v30, %v63_v26  ;;  %v2484_v35 = vmul.f32 0.0625, %v51_v31  ;;  %v72_v36 = vadd.f32 %v71_v32, %v70_v28  ;;  %v90_v21 = vrot.slane %v89_v19, 2 }
  0x1e   :  { %v2489_v38 = vmul.f32 0.0625, %v58_v33 }
  0x1f   :  { %v2491_v39 = vmul.f32 0.0625, %v65_v34  ;;  %v110_v40 = vsub.f32 %v29_v0, %v2484_v35  ;;  %v111_v41 = vsub.f32 %v30_v1, %v2484_v35  ;;  %v2497_v42 = vmul.f32 0.0625, %v72_v36  ;;  %v40_v0 = vld [vmem:[#allocation2 + $0x58] sm:$0xff] }
  0x20   :  { %v112_v43 = vsub.f32 %v31_v2, %v2489_v38  ;;  %v113_v44 = vsub.f32 %v32_v4, %v2489_v38  ;;  %v73_v1 = vadd.f32 %v38_v62, %v37_v61  ;;  %v80_v2 = vadd.f32 %v40_v0, %v39_v63 }
  0x21   :  { %v114_v45 = vsub.f32 %v33_v5, %v2491_v39  ;;  %v115_v46 = vsub.f32 %v34_v6, %v2491_v39  ;;  %271 = vxpose.xlu0.b32.start [1/2] (short) %v110_v40, 128  ;;  %v126_v47 = vmul.f32 %v110_v40, %v110_v40  ;;  %v127_v48 = vmul.f32 %v111_v41, %v111_v41 }
  0x22   :  { %v116_v49 = vsub.f32 %v35_v9, %v2497_v42  ;;  %v117_v50 = vsub.f32 %v36_v10, %v2497_v42  ;;  %303 = vxpose.xlu1.b32.start [1/2] (short) %v112_v43, 128  ;;  %v128_v51 = vmul.f32 %v112_v43, %v112_v43  ;;  %v129_v52 = vmul.f32 %v113_v44, %v113_v44 }
  0x23   :  { %v130_v53 = vmul.f32 %v114_v45, %v114_v45  ;;  %v131_v54 = vmul.f32 %v115_v46, %v115_v46  ;;  %v2507_v55 = vadd.f32 %v127_v48, %v126_v47  ;;  %v74_v3 = vrot.slane %v73_v1, 4 }
  0x24   :  { %v132_v56 = vmul.f32 %v116_v49, %v116_v49  ;;  %v133_v57 = vmul.f32 %v117_v50, %v117_v50  ;;  %v2509_v58 = vadd.f32 %v129_v52, %v128_v51  ;;  %v81_v4 = vrot.slane %v80_v2, 4 }
  0x25   :  { %v2511_v59 = vadd.f32 %v131_v54, %v130_v53  ;;  %272 = vxpose.xlu0.b32.end [2/2] (short) %v111_v41, 128  ;;  %v75_v5 = vadd.f32 %v74_v3, %v73_v1  ;;  %v91_v23 = vadd.f32 %v90_v21, %v89_v19 }
  0x26   :  { %v2513_v60 = vadd.f32 %v133_v57, %v132_v56  ;;  %304 = vxpose.xlu1.b32.end [2/2] (short) %v113_v44, 128  ;;  %v82_v6 = vadd.f32 %v81_v4, %v80_v2 }
  0x27   :  { %v76_v7 = vrot.slane %v75_v5, 2  ;;  %v92_v25 = vrot.slane %v91_v23, 1 }
  0x28   :  { %v83_v8 = vrot.slane %v82_v6, 2 }
  0x29   :  { %v77_v9 = vadd.f32 %v76_v7, %v75_v5  ;;  %v93_v27 = vadd.f32 %v92_v25, %v91_v23 }
  0x2a   :  { %v84_v10 = vadd.f32 %v83_v8, %v82_v6 }
  0x2b   :  { %v78_v11 = vrot.slane %v77_v9, 1  ;;  %v2529_v29 = vmul.f32 0.0625, %v93_v27 }
  0x2c   :  { %v85_v12 = vrot.slane %v84_v10, 1 }
  0x2d   :  { %v79_v16 = vadd.f32 %v78_v11, %v77_v9  ;;  %v122_v33 = vsub.f32 %v41_v13, %v2529_v29  ;;  %v123_v37 = vsub.f32 %v42_v14, %v2529_v29 }
  0x2e   :  { %v86_v18 = vadd.f32 %v85_v12, %v84_v10 }
  0x2f   :  { %v2515_v20 = vmul.f32 0.0625, %v79_v16  ;;  %v138_v36 = vmul.f32 %v122_v33, %v122_v33  ;;  %v139_v41 = vmul.f32 %v123_v37, %v123_v37 }
  0x30   :  { %v2517_v22 = vmul.f32 0.0625, %v86_v18 }
  0x31   :  { %v2520_v24 = vsub.f32 %v37_v61, %v2515_v20  ;;  %v2527_v28 = vsub.f32 %v38_v62, %v2515_v20  ;;  %v2541_v44 = vadd.f32 %v139_v41, %v138_v36  ;;  %v2456_v62 = vmov 0   ;;  %v43_v36 = vld [vmem:[#allocation2 + $0x70] sm:$0xff] }
  0x32   :  { %v2523_v26 = vsub.f32 %v39_v63, %v2517_v22  ;;  %v2533_v30 = vsub.f32 %v40_v0, %v2517_v22 }
  0x5e   :  { %335 = vxpose.xlu0.b32.start [1/2] (short) %v114_v45, 128 }
  0x5f   :  { %367 = vxpose.xlu1.b32.start [1/2] (short) %v116_v49, 128 }
  0x62   :  { %336 = vxpose.xlu0.b32.end [2/2] (short) %v115_v46, 128 }
  0x63   :  { %368 = vxpose.xlu1.b32.end [2/2] (short) %v117_v50, 128 }
  0x9b   :  { %399 = vxpose.xlu0.b32.start [1/2] (short) %v2520_v24, 128 }
  0x9c   :  { %431 = vxpose.xlu1.b32.start [1/2] (short) %v2523_v26, 128 }
  0x9d   :  { %v287_v31 = vpop.trf.xlu0 }
  0x9e   :  { %2191 = vmatprep.mubr.msk.f32.mxu0 %vm527_vm0, %v287_v31  ;;  %v319_v32 = vpop.trf.xlu1 }
  0x9f   :  { %400 = vxpose.xlu0.b32.end [2/2] (short) %v2527_v28, 128 }
  0xa0   :  { %432 = vxpose.xlu1.b32.end [2/2] (short) %v2533_v30, 128 }
  0xa1   :  { %v288_v34 = vpop.trf.xlu0 }
  0xa2   :  { %2192 = vmatmul.mubr.msk.f32.vlgmr.msra.gmra.mxu0 %vm527_vm0, %v288_v34  ;;  %v320_v40 = vpop.trf.xlu1 }
  0xa5   :  { %v289_v43 = vpop.trf.xlu0 }
  0xa6   :  { %2194 = vmatprep.mubr.msk.f32.mxu0 %vm527_vm0, %v289_v43  ;;  %v321_v45 = vpop.trf.xlu1 }
  0xa9   :  { %v290_v46 = vpop.trf.xlu0 }
  0xaa   :  { %2195 = vmatmul.mubr.msk.f32.gmra.mxu0 %vm527_vm0, %v290_v46  ;;  %v322_v47 = vpop.trf.xlu1 }
  0xad   :  { %v291_v48 = vpop.trf.xlu0 }
  0xae   :  { %2197 = vmatprep.mubr.msk.f32.mxu0 %vm527_vm0, %v291_v48  ;;  %v323_v49 = vpop.trf.xlu1 }
  0xb1   :  { %v292_v50 = vpop.trf.xlu0 }
  0xb2   :  { %2198 = vmatmul.mubr.msk.f32.gmra.mxu0 %vm527_vm0, %v292_v50  ;;  %v324_v51 = vpop.trf.xlu1 }
  0xb5   :  { %v293_v52 = vpop.trf.xlu0 }
  0xb6   :  { %2200 = vmatprep.mubr.msk.f32.mxu0 %vm527_vm0, %v293_v52  ;;  %v325_v53 = vpop.trf.xlu1 }
  0xb9   :  { %v294_v54 = vpop.trf.xlu0 }
  0xba   :  { %2201 = vmatmul.mubr.msk.f32.gmra.mxu0 %vm527_vm0, %v294_v54  ;;  %v326_v56 = vpop.trf.xlu1 }
  0xbd   :  { %v295_v57 = vpop.trf.xlu0 }
  0xbe   :  { %2203 = vmatprep.mubr.msk.f32.mxu0 %vm527_vm0, %v295_v57  ;;  %v327_v61 = vpop.trf.xlu1  ;;  %2391 = vset.pattern.permute.xlu1 %v2456_v62 }
  0xc1   :  { %v296_v63 = vpop.trf.xlu0 }
  0xc2   :  { %2204 = vmatmul.mubr.msk.f32.gmra.mxu0 %vm527_vm0, %v296_v63  ;;  %v328_v0 = vpop.trf.xlu1 }
  0xc5   :  { %v297_v1 = vpop.trf.xlu0 }
  0xc6   :  { %2206 = vmatprep.mubr.msk.f32.mxu0 %vm527_vm0, %v297_v1  ;;  %v329_v2 = vpop.trf.xlu1 }
  0xc9   :  { %v298_v3 = vpop.trf.xlu0 }
  0xca   :  { %2207 = vmatmul.mubr.msk.f32.gmra.mxu0 %vm527_vm0, %v298_v3  ;;  %v330_v4 = vpop.trf.xlu1 }
  0xcd   :  { %v299_v5 = vpop.trf.xlu0 }
  0xce   :  { %2209 = vmatprep.mubr.msk.f32.mxu0 %vm527_vm0, %v299_v5  ;;  %v331_v6 = vpop.trf.xlu1 }
  0xd1   :  { %v300_v7 = vpop.trf.xlu0 }
  0xd2   :  { %2210 = vmatmul.mubr.msk.f32.gmra.mxu0 %vm527_vm0, %v300_v7  ;;  %v332_v8 = vpop.trf.xlu1 }
  0xd5   :  { %v301_v9 = vpop.trf.xlu0 }
  0xd6   :  { %2212 = vmatprep.mubr.msk.f32.mxu0 %vm527_vm0, %v301_v9  ;;  %v333_v10 = vpop.trf.xlu1 }
  0xd8   :  { %463 = vxpose.xlu0.b32.start [1/2] (short) %v122_v33, 128 }
  0xd9   :  { %v302_v11 = vpop.trf.xlu0 }
  0xda   :  { %2213 = vmatmul.mubr.msk.f32.gmra.mxu0 %vm527_vm0, %v302_v11  ;;  %v334_v12 = vpop.trf.xlu1 }
  0xdb   :  { %2215 = vmatprep.mubr.msk.f32.mxu0 %vm527_vm0, %v319_v32  ;;  %v1876_v32 = vld [vmem:[%s2873_s2] sm:$0xff]  ;;  %s2457_s2 = smov [#allocation5]  }
  0xdc   :  { %464 = vxpose.xlu0.b32.end [2/2] (short) %v123_v37, 128  ;;  %v44_v37 = vld [vmem:[#allocation2 + $0x78] sm:$0xff]  ;;  %s1919_s21 = sshll.u32 %s2457_s2, 4  ;;  %s1920_s21 = int_to_ptr.vmem [resolvable:$true] %s1919_s21 }
  0xdd   :  { %v351_v13 = vpop.trf.xlu0  ;;  %v94_v43 = vadd.f32 %v44_v37, %v43_v36  ;;  %s2429_s22 = scalar_lea.vmem %s1920_s21, 1024  ;;  %p2434_p6 = scmp.lt.s32.totalorder %s1920_s21, %s1920_s21 }
  0xde   :  { %2216 = vmatmul.mubr.msk.f32.gmra.mxu0 %vm527_vm0, %v320_v40  ;;  %v2560_v14 = vpop.trf.xlu1  ;;  %p2430_p5 = scmp.ne.s32.totalorder %s1920_s21, %s2429_s22  ;;  %p2435_p7 = scmp.lt.s32.totalorder %s2429_s22, %s2429_s22 }
  0xdf   :  { %2218 = vmatprep.mubr.msk.f32.mxu0 %vm527_vm0, %v321_v45 }
  0xe0   :  { %p2436_p8 = por %p2435_p7, %p2434_p6 }
  0xe1   :  { %v352_v15 = vpop.trf.xlu0 }
  0xe2   :  { %2219 = vmatmul.mubr.msk.f32.gmra.mxu0 %vm527_vm0, %v322_v47  ;;  %v2564_v16 = vpop.trf.xlu1  ;;  %v95_v47 = vrot.slane %v94_v43, 4  ;;  %p2437_p9 = pnand %p2436_p8, %p2430_p5 }
  0xe3   :  { %2221 = vmatprep.mubr.msk.f32.mxu0 %vm527_vm0, %v323_v49 }
  0xe4   :  { %v96_v50 = vadd.f32 %v95_v47, %v94_v43 }
  0xe5   :  { %v353_v17 = vpop.trf.xlu0 }
  0xe6   :  { %2222 = vmatmul.mubr.msk.f32.gmra.mxu0 %vm527_vm0, %v324_v51  ;;  %v2568_v18 = vpop.trf.xlu1 }
  0xe7   :  { %2224 = vmatprep.mubr.msk.f32.mxu0 %vm527_vm0, %v325_v53  ;;  %v97_v53 = vrot.slane %v96_v50, 2 }
  0xe9   :  { %v354_v19 = vpop.trf.xlu0  ;;  %v98_v57 = vadd.f32 %v97_v53, %v96_v50 }
  0xea   :  { %2225 = vmatmul.mubr.msk.f32.gmra.mxu0 %vm527_vm0, %v326_v56  ;;  %v2572_v21 = vpop.trf.xlu1 }
  0xeb   :  { %2227 = vmatprep.mubr.msk.f32.mxu0 %vm527_vm0, %v327_v61 }
  0xed   :  { %v355_v23 = vpop.trf.xlu0 }
  0xee   :  { %2228 = vmatmul.mubr.msk.f32.gmra.mxu0 %vm527_vm0, %v328_v0  ;;  %v2576_v25 = vpop.trf.xlu1  ;;  %v99_v0 = vrot.slane %v98_v57, 1 }
  0xef   :  { %2230 = vmatprep.mubr.msk.f32.mxu0 %vm527_vm0, %v329_v2 }
  0xf0   :  { %v100_v3 = vadd.f32 %v99_v0, %v98_v57 }
  0xf1   :  { %v356_v27 = vpop.trf.xlu0 }
  0xf2   :  { %2231 = vmatmul.mubr.msk.f32.gmra.mxu0 %vm527_vm0, %v330_v4  ;;  %v2580_v31 = vpop.trf.xlu1 }
  0xf3   :  { %2233 = vmatprep.mubr.msk.f32.mxu0 %vm527_vm0, %v331_v6  ;;  %v2608_v6 = vmul.f32 0.0625, %v100_v3 }
  0xf5   :  { %v357_v33 = vpop.trf.xlu0  ;;  %v2614_v9 = vsub.f32 %v43_v36, %v2608_v6  ;;  %v164_v36 = vrot.slane %v2513_v60, 4 }
  0xf6   :  { %2234 = vmatmul.mubr.msk.f32.gmra.mxu0 %vm527_vm0, %v332_v8  ;;  %v2587_v34 = vpop.trf.xlu1  ;;  %1879 = vperm.xlu1 %2391, %v1876_v32   ;;  %v150_v32 = vrot.slane %v2509_v58, 4 }
  0xf7   :  { %2236 = vmatprep.mubr.msk.f32.mxu0 %vm527_vm0, %v333_v10 }
  0xf8   :  { %v151_v43 = vadd.f32 %v150_v32, %v2509_v58 }
  0xf9   :  { %v358_v40 = vpop.trf.xlu0 }
  0xfa   :  { %2237 = vmatmul.mubr.msk.f32.gmra.mxu0 %vm527_vm0, %v334_v12  ;;  %v2591_v41 = vpop.trf.xlu1  ;;  %v2625_v12 = vsub.f32 %v44_v37, %v2608_v6 }
  0xfb   :  { %2239 = vmatprep.mubr.msk.f32.mxu0 %vm527_vm0, %v351_v13 }
  0xfd   :  { %v359_v45 = vpop.trf.xlu0 }
  0xfe   :  { %2240 = vmatmul.mubr.msk.f32.gmra.mxu0 %vm527_vm0, %v352_v15  ;;  %v391_v46 = vpop.trf.xlu1 }
  0xff   :  { %2242 = vmatprep.mubr.msk.f32.mxu0 %vm527_vm0, %v353_v17 }
 0x101   :  { %v360_v48 = vpop.trf.xlu0 }
 0x102   :  { %2243 = vmatmul.mubr.msk.f32.gmra.mxu0 %vm527_vm0, %v354_v19  ;;  %v392_v49 = vpop.trf.xlu1 }
 0x103   :  { %2245 = vmatprep.mubr.msk.f32.mxu0 %vm527_vm0, %v355_v23 }
 0x105   :  { %v361_v51 = vpop.trf.xlu0 }
 0x106   :  { %2246 = vmatmul.mubr.msk.f32.gmra.mxu0 %vm527_vm0, %v356_v27  ;;  %v393_v52 = vpop.trf.xlu1  ;;  %v143_v27 = vrot.slane %v2507_v55, 4 }
 0x107   :  { %2248 = vmatprep.mubr.msk.f32.mxu0 %vm527_vm0, %v357_v33  ;;  %v157_v33 = vrot.slane %v2511_v59, 4 }
 0x108   :  { %v144_v37 = vadd.f32 %v143_v27, %v2507_v55  ;;  %v152_v55 = vrot.slane %v151_v43, 2 }
 0x109   :  { %v362_v54 = vpop.trf.xlu0 }
 0x10a   :  { %2249 = vmatmul.mubr.msk.f32.gmra.mxu0 %vm527_vm0, %v358_v40  ;;  %v394_v56 = vpop.trf.xlu1  ;;  %v185_v40 = vrot.slane %v2541_v44, 4  ;;  %v145_v47 = vrot.slane %v144_v37, 2 }
 0x10b   :  { %2251 = vmatprep.mubr.msk.f32.mxu0 %vm527_vm0, %v359_v45  ;;  %v158_v45 = vadd.f32 %v157_v33, %v2511_v59 }
 0x10c   :  { %v146_v58 = vadd.f32 %v145_v47, %v144_v37 }
 0x10d   :  { %v363_v61 = vpop.trf.xlu0 }
 0x10e   :  { %2252 = vmatmul.mubr.msk.f32.gmra.mxu0 %vm527_vm0, %v360_v48  ;;  %v395_v63 = vpop.trf.xlu1  ;;  %v186_v48 = vadd.f32 %v185_v40, %v2541_v44 }
 0x10f   :  { %2254 = vmatprep.mubr.msk.f32.mxu0 %vm527_vm0, %v361_v51  ;;  %v159_v51 = vrot.slane %v158_v45, 2 }
 0x110   :  { %v187_v53 = vrot.slane %v186_v48, 2 }
 0x111   :  { %v364_v1 = vpop.trf.xlu0  ;;  %v160_v59 = vadd.f32 %v159_v51, %v158_v45 }
 0x112   :  { %2255 = vmatmul.mubr.msk.f32.gmra.mxu0 %vm527_vm0, %v362_v54  ;;  %v396_v2 = vpop.trf.xlu1  ;;  %v188_v44 = vadd.f32 %v187_v53, %v186_v48 }
 0x113   :  { %2257 = vmatprep.mubr.msk.f32.mxu0 %vm527_vm0, %v363_v61  ;;  %v147_v61 = vrot.slane %v146_v58, 1 }
 0x115   :  { %v365_v4 = vpop.trf.xlu0  ;;  %v148_v3 = vadd.f32 %v147_v61, %v146_v58 }
 0x116   :  { %2258 = vmatmul.mubr.msk.f32.gmra.mxu0 %vm527_vm0, %v364_v1  ;;  %v397_v5 = vpop.trf.xlu1  ;;  %v161_v1 = vrot.slane %v160_v59, 1 }
 0x117   :  { %2260 = vmatprep.mubr.msk.f32.mxu0 %vm527_vm0, %v365_v4  ;;  %v189_v4 = vrot.slane %v188_v44, 1 }
 0x119   :  { %v366_v7 = vpop.trf.xlu0 }
 0x11a   :  { %2261 = vmatmul.mubr.msk.f32.gmra.mxu0 %vm527_vm0, %v366_v7  ;;  %v398_v8 = vpop.trf.xlu1 }
 0x11b   :  { %2263 = vmatprep.mubr.msk.f32.mxu0 %vm527_vm0, %v2560_v14 }
 0x11d   :  { %v415_v10 = vpop.trf.xlu0 }
 0x11e   :  { %2264 = vmatmul.mubr.msk.f32.gmra.mxu0 %vm527_vm0, %v2564_v16  ;;  %2287 = vmatprep.mubr.msk.f32.mxu1 %vm527_vm0, %v415_v10  ;;  %v2619_v11 = vpop.trf.xlu1  ;;  %v162_v10 = vadd.f32 %v161_v1, %v160_v59 }
 0x11f   :  { %2266 = vmatprep.mubr.msk.f32.mxu0 %vm527_vm0, %v2568_v18  ;;  %495 = vxpose.xlu1.b32.start [1/2] (short) %v2614_v9, 128 }
 0x120   :  { %v200_v27 = vmul.f32 0.0625, %v162_v10 }
 0x121   :  { %v416_v13 = vpop.trf.xlu0 }
 0x122   :  { %2288 = vmatmul.mubr.msk.f32.vlgmr.msra.gmra.mxu1 %vm527_vm0, %v416_v13  ;;  %2267 = vmatmul.mubr.msk.f32.gmra.mxu0 %vm527_vm0, %v2572_v21  ;;  %v2630_v14 = vpop.trf.xlu1 }
 0x123   :  { %2269 = vmatprep.mubr.msk.f32.mxu0 %vm527_vm0, %v2576_v25  ;;  %496 = vxpose.xlu1.b32.end [2/2] (short) %v2625_v12, 128 }
 0x125   :  { %v417_v15 = vpop.trf.xlu0 }
 0x126   :  { %2290 = vmatprep.mubr.msk.f32.mxu1 %vm527_vm0, %v417_v15  ;;  %2270 = vmatmul.mubr.msk.f32.gmra.mxu0 %vm527_vm0, %v2580_v31  ;;  %v2638_v16 = vpop.trf.xlu1  ;;  %v198_v15 = vmul.f32 0.0625, %v148_v3 }
 0x127   :  { %2272 = vmatprep.mubr.msk.f32.mxu0 %vm527_vm0, %v2587_v34 }
 0x128   :  { %v2688_v33 = vadd.f32 1e-05, %v198_v15 }
 0x129   :  { %v418_v17 = vpop.trf.xlu0 }
 0x12a   :  { %2291 = vmatmul.mubr.msk.f32.gmra.mxu1 %vm527_vm0, %v418_v17  ;;  %2273 = vmatmul.mubr.msk.f32.gmra.mxu0 %vm527_vm0, %v2591_v41  ;;  %v2645_v18 = vpop.trf.xlu1  ;;  %v190_v17 = vadd.f32 %v189_v4, %v188_v44  ;;  %2393 = vrsqrt.f32 %v2688_v33  ;;  %vm216_vm1 = vcmp.eq.f32.partialorder %v2688_v33, inf  ;;  %vm218_vm4 = vcmp.eq.f32.partialorder %v2688_v33, 0.0 }
 0x12b   :  { %2275 = vmatprep.mubr.msk.f32.mxu0 %vm527_vm0, %v391_v46  ;;  %v165_v46 = vadd.f32 %v164_v36, %v2513_v60 }
 0x12c   :  { %v204_v36 = vmul.f32 0.0625, %v190_v17 }
 0x12d   :  { %v419_v19 = vpop.trf.xlu0 }
 0x12e   :  { %2293 = vmatprep.mubr.msk.f32.mxu1 %vm527_vm0, %v419_v19  ;;  %2276 = vmatmul.mubr.msk.f32.gmra.mxu0 %vm527_vm0, %v392_v49  ;;  %v2650_v21 = vpop.trf.xlu1  ;;  %v2697_v45 = vadd.f32 1e-05, %v204_v36 }
 0x12f   :  { %2278 = vmatprep.mubr.msk.f32.mxu0 %vm527_vm0, %v393_v52  ;;  %v166_v52 = vrot.slane %v165_v46, 2 }
 0x130   :  { %vm258_vm6 = vcmp.eq.f32.partialorder %v2697_v45, inf  ;;  %v261_v10 = vand.u32 2147483648, %v2697_v45  ;;  %vm260_vm10 = vcmp.eq.f32.partialorder %v2697_v45, 0.0 }
 0x131   :  { %v420_v23 = vpop.trf.xlu0  ;;  %v167_v60 = vadd.f32 %v166_v52, %v165_v46 }
 0x132   :  { %2294 = vmatmul.mubr.msk.f32.gmra.mxu1 %vm527_vm0, %v420_v23  ;;  %2279 = vmatmul.mubr.msk.f32.gmra.mxu0 %vm527_vm0, %v394_v56  ;;  %v2655_v25 = vpop.trf.xlu1  ;;  %v153_v56 = vadd.f32 %v152_v55, %v151_v43 }
 0x133   :  { %2281 = vmatprep.mubr.msk.f32.mxu0 %vm527_vm0, %v395_v63 }
 0x134   :  { %v154_v0 = vrot.slane %v153_v56, 1 }
 0x135   :  { %v421_v31 = vpop.trf.xlu0 }
 0x136   :  { %2296 = vmatprep.mubr.msk.f32.mxu1 %vm527_vm0, %v421_v31  ;;  %2282 = vmatmul.mubr.msk.f32.gmra.mxu0 %vm527_vm0, %v396_v2  ;;  %v2664_v34 = vpop.trf.xlu1  ;;  %v168_v2 = vrot.slane %v167_v60, 1 }
 0x137   :  { %2284 = vmatprep.mubr.msk.f32.mxu0 %vm527_vm0, %v397_v5  ;;  %v2394_v58 = vpop.eup %2393 }
 0x138   :  { %v169_v13 = vadd.f32 %v168_v2, %v167_v60  ;;  %v215_v60 = vmul.f32 %v2394_v58, %v2688_v33 }
 0x139   :  { %v422_v41 = vpop.trf.xlu0 }
 0x13a   :  { %2297 = vmatmul.mubr.msk.f32.gmra.mxu1 %vm527_vm0, %v422_v41  ;;  %2285 = vmatmul.mubr.msk.f32.gmra.mxu0 %vm527_vm0, %v398_v8  ;;  %v2675_v50 = vpop.trf.xlu1  ;;  %v155_v8 = vadd.f32 %v154_v0, %v153_v56  ;;  %v201_v32 = vmul.f32 0.0625, %v169_v13  ;;  %v2693_v41 = vadd.f32 1e-05, %v200_v27  ;;  %v217_v1 = vsel %vm216_vm1, %v2688_v33, %v215_v60 }
 0x13c   :  { %v199_v23 = vmul.f32 0.0625, %v155_v8  ;;  %v2695_v43 = vadd.f32 1e-05, %v201_v32  ;;  %vm230_vm3 = vcmp.eq.f32.partialorder %v2693_v41, inf  ;;  %vm232_vm8 = vcmp.eq.f32.partialorder %v2693_v41, 0.0 }
 0x13d   :  { %v423_v49 = vpop.trf.xlu0 }
 0x13e   :  { %2299 = vmatprep.mubr.msk.f32.mxu1 %vm527_vm0, %v423_v49  ;;  %v2679_v57 = vpop.trf.xlu1  ;;  %v2690_v40 = vadd.f32 1e-05, %v199_v23  ;;  %vm237_vm5 = vcmp.eq.f32.partialorder %v2695_v43, inf  ;;  %v240_v8 = vand.u32 2147483648, %v2695_v43  ;;  %vm239_vm9 = vcmp.eq.f32.partialorder %v2695_v43, 0.0 }
 0x140   :  { %2395 = vrsqrt.f32 %v2690_v40  ;;  %vm223_vm2 = vcmp.eq.f32.partialorder %v2690_v40, inf  ;;  %vm225_vm7 = vcmp.eq.f32.partialorder %v2690_v40, 0.0  ;;  %v226_v3 = vand.u32 2147483648, %v2690_v40 }
 0x141   :  { %v424_v54 = vpop.trf.xlu0  ;;  %2397 = vrsqrt.f32 %v2693_v41 }
 0x142   :  { %2300 = vmatmul.mubr.msk.f32.gmra.mxu1 %vm527_vm0, %v424_v54  ;;  %v2682_v7 = vpop.trf.xlu1  ;;  %2399 = vrsqrt.f32 %v2695_v43 }
 0x143   :  { %2401 = vrsqrt.f32 %v2697_v45 }
 0x145   :  { %v425_v63 = vpop.trf.xlu0 }
 0x146   :  { %2302 = vmatprep.mubr.msk.f32.mxu1 %vm527_vm0, %v425_v63  ;;  %v2686_v31 = vpop.trf.xlu1  ;;  %v219_v63 = vand.u32 2147483648, %v2688_v33 }
 0x149   :  { %v426_v5 = vpop.trf.xlu0 }
 0x14a   :  { %2303 = vmatmul.mubr.msk.f32.gmra.mxu1 %vm527_vm0, %v426_v5  ;;  %v2699_v47 = vpop.trf.xlu1  ;;  %v233_v5 = vand.u32 2147483648, %v2693_v41 }
 0x14d   :  { %v427_v19 = vpop.trf.xlu0 }
 0x14e   :  { %2305 = vmatprep.mubr.msk.f32.mxu1 %vm527_vm0, %v427_v19  ;;  %v2710_v49 = vpop.trf.xlu1  ;;  %v220_v19 = vsel %vm218_vm4, %v219_v63, %v217_v1 }
 0x151   :  { %v428_v37 = vpop.trf.xlu0 }
 0x152   :  { %2306 = vmatmul.mubr.msk.f32.gmra.mxu1 %vm527_vm0, %v428_v37  ;;  %v2718_v51 = vpop.trf.xlu1 }
 0x155   :  { %v429_v46 = vpop.trf.xlu0 }
 0x156   :  { %2308 = vmatprep.mubr.msk.f32.mxu1 %vm527_vm0, %v429_v46 }
 0x159   :  { %v430_v48 = vpop.trf.xlu0 }
 0x15a   :  { %2309 = vmatmul.mubr.msk.f32.gmra.mxu1 %vm527_vm0, %v430_v48 }
 0x15b   :  { %2311 = vmatprep.mubr.msk.f32.mxu1 %vm527_vm0, %v2619_v11  ;;  %v2396_v11 = vpop.eup %2395 }
 0x15c   :  { %v2398_v54 = vpop.eup %2397 }
 0x15d   :  { %v2712_v55 = vpop.trf.xlu0  ;;  %v2400_v59 = vpop.eup %2399  ;;  %v229_v61 = vmul.f32 %v2398_v54, %v2693_v41 }
 0x15e   :  { %2312 = vmatmul.mubr.msk.f32.gmra.mxu1 %vm527_vm0, %v2630_v14 }
 0x15f   :  { %2314 = vmatprep.mubr.msk.f32.mxu1 %vm527_vm0, %v2638_v16  ;;  %v2402_v16 = vpop.eup %2401  ;;  %v231_v4 = vsel %vm230_vm3, %v2693_v41, %v229_v61 }
 0x160   :  { %v234_v27 = vsel %vm232_vm8, %v233_v5, %v231_v4 }
 0x161   :  { %v2720_v52 = vpop.trf.xlu0 }
 0x162   :  { %v2193_v53 = vpop.f32.mrf.mxu0  ;;  %2315 = vmatmul.mubr.msk.f32.gmra.mxu1 %vm527_vm0, %v2645_v18  ;;  %v461_v18 = vpop.trf.xlu1 }
 0x163   :  { %2317 = vmatprep.mubr.msk.f32.mxu1 %vm527_vm0, %v2650_v21  ;;  %v222_v21 = vmul.f32 %v2396_v11, %v2690_v40 }
 0x164   :  { %v981_v56 = vpop.f32.mrf.mxu0 }
 0x165   :  { %1620 = vxpose.xlu0.b32.start [1/16] (narrow) %v981_v56, 8  ;;  %v2726_v14 = vpop.trf.xlu0  ;;  %v224_v2 = vsel %vm223_vm2, %v2690_v40, %v222_v21 }
 0x166   :  { %2318 = vmatmul.mubr.msk.f32.gmra.mxu1 %vm527_vm0, %v2655_v25  ;;  %v236_v25 = vmul.f32 %v2400_v59, %v2695_v43  ;;  %v462_v13 = vpop.trf.xlu1  ;;  %v227_v23 = vsel %vm225_vm7, %v226_v3, %v224_v2 }
 0x167   :  { %2320 = vmatprep.mubr.msk.f32.mxu1 %vm527_vm0, %v2664_v34  ;;  %v257_v34 = vmul.f32 %v2402_v16, %v2697_v45 }
 0x168   :  { %v238_v15 = vsel %vm237_vm5, %v2695_v43, %v236_v25 }
 0x169   :  { %1621 = vxpose.xlu0.b32.cont [2/16] (narrow) %v2193_v53, 8  ;;  %v2737_v44 = vpop.trf.xlu0  ;;  %v259_v17 = vsel %vm258_vm6, %v2697_v45, %v257_v34  ;;  %v241_v32 = vsel %vm239_vm9, %v240_v8, %v238_v15 }
 0x16a   :  { %v2196_v0 = vpop.f32.mrf.mxu0  ;;  %2321 = vmatmul.mubr.msk.f32.gmra.mxu1 %vm527_vm0, %v2675_v50  ;;  %v262_v36 = vsel %vm260_vm10, %v261_v10, %v259_v17 }
 0x16b   :  { %2323 = vmatprep.mubr.msk.f32.mxu1 %vm527_vm0, %v2679_v57 }
 0x16c   :  { %v991_v50 = vpop.f32.mrf.mxu0 }
 0x16d   :  { %1622 = vxpose.xlu0.b32.cont [3/16] (narrow) %v991_v50, 8  ;;  %v483_v57 = vpop.trf.xlu0 }
 0x16e   :  { %2324 = vmatmul.mubr.msk.f32.gmra.mxu1 %vm527_vm0, %v2682_v7 }
 0x16f   :  { %2326 = vmatprep.mubr.msk.f32.mxu1 %vm527_vm0, %v2686_v31 }
 0x171   :  { %1623 = vxpose.xlu0.b32.cont [4/16] (narrow) %v2196_v0, 8  ;;  %v2775_v37 = vpop.permute.xlu1 %1879  ;;  %v484_v43 = vpop.trf.xlu0 }
 0x172   :  { %v2199_v45 = vpop.f32.mrf.mxu0  ;;  %2327 = vmatmul.mubr.msk.f32.gmra.mxu1 %vm527_vm0, %v2699_v47  ;;  %v2780_v7 = vmul.f32 %v2775_v37, %v220_v19  ;;  %v2783_v31 = vmul.f32 %v2775_v37, %v227_v23  ;;  %v2788_v33 = vmul.f32 %v2775_v37, %v234_v27  ;;  %v2791_v40 = vmul.f32 %v2775_v37, %v241_v32 }
 0x173   :  { %2329 = vmatprep.mubr.msk.f32.mxu1 %vm527_vm0, %v2710_v49  ;;  %v2794_v41 = vmul.f32 %v2775_v37, %v262_v36 }
 0x174   :  { %v1001_v46 = vpop.f32.mrf.mxu0 }
 0x175   :  { %1624 = vxpose.xlu0.b32.cont [5/16] (narrow) %v1001_v46, 8  ;;  %v485_v47 = vpop.trf.xlu0 }
 0x176   :  { %2330 = vmatmul.mubr.msk.f32.gmra.mxu1 %vm527_vm0, %v2718_v51 }
 0x177   :  { %2332 = vmatprep.mubr.msk.f32.mxu1 %vm527_vm0, %v461_v18 }
 0x179   :  { %1625 = vxpose.xlu0.b32.cont [6/16] (narrow) %v2199_v45, 8  ;;  %v486_v48 = vpop.trf.xlu0 }
 0x17a   :  { %v2202_v49 = vpop.f32.mrf.mxu0  ;;  %2333 = vmatmul.mubr.msk.f32.gmra.mxu1 %vm527_vm0, %v462_v13 }
 0x17b   :  { %2335 = vmatprep.mubr.msk.f32.mxu1 %vm527_vm0, %v2712_v55 }
 0x17c   :  { %v1011_v58 = vpop.f32.mrf.mxu0 }
 0x17d   :  { %1626 = vxpose.xlu0.b32.cont [7/16] (narrow) %v1011_v58, 8  ;;  %v487_v53 = vpop.trf.xlu0 }
 0x17e   :  { %2336 = vmatmul.mubr.msk.f32.gmra.mxu1 %vm527_vm0, %v2720_v52 }
 0x17f   :  { %2338 = vmatprep.mubr.msk.f32.mxu1 %vm527_vm0, %v2726_v14 }
 0x181   :  { %1627 = vxpose.xlu0.b32.cont [8/16] (narrow) %v2202_v49, 8  ;;  %v488_v51 = vpop.trf.xlu0 }
 0x182   :  { %v2205_v11 = vpop.f32.mrf.mxu0  ;;  %2339 = vmatmul.mubr.msk.f32.gmra.mxu1 %vm527_vm0, %v2737_v44 }
 0x183   :  { %2341 = vmatprep.mubr.msk.f32.mxu1 %vm527_vm0, %v483_v57 }
 0x184   :  { %v1021_v54 = vpop.f32.mrf.mxu0 }
 0x185   :  { %1628 = vxpose.xlu0.b32.cont [9/16] (narrow) %v1021_v54, 8  ;;  %v489_v55 = vpop.trf.xlu0 }
 0x186   :  { %2342 = vmatmul.mubr.msk.f32.gmra.mxu1 %vm527_vm0, %v484_v43 }
 0x187   :  { %2344 = vmatprep.mubr.msk.f32.mxu1 %vm527_vm0, %v485_v47 }
 0x189   :  { %1629 = vxpose.xlu0.b32.cont [10/16] (narrow) %v2205_v11, 8  ;;  %v490_v52 = vpop.trf.xlu0 }
 0x18a   :  { %v2208_v56 = vpop.f32.mrf.mxu0  ;;  %2345 = vmatmul.mubr.msk.f32.gmra.mxu1 %vm527_vm0, %v486_v48 }
 0x18b   :  { %2347 = vmatprep.mubr.msk.f32.mxu1 %vm527_vm0, %v487_v53 }
 0x18c   :  { %v1031_v59 = vpop.f32.mrf.mxu0 }
 0x18d   :  { %1630 = vxpose.xlu0.b32.cont [11/16] (narrow) %v1031_v59, 8  ;;  %v491_v14 = vpop.trf.xlu0 }
 0x18e   :  { %2348 = vmatmul.mubr.msk.f32.gmra.mxu1 %vm527_vm0, %v488_v51 }
 0x18f   :  { %2350 = vmatprep.mubr.msk.f32.mxu1 %vm527_vm0, %v489_v55 }
 0x191   :  { %1631 = vxpose.xlu0.b32.cont [12/16] (narrow) %v2208_v56, 8  ;;  %v492_v16 = vpop.trf.xlu0 }
 0x192   :  { %v2211_v60 = vpop.f32.mrf.mxu0  ;;  %2351 = vmatmul.mubr.msk.f32.gmra.mxu1 %vm527_vm0, %v490_v52 }
 0x193   :  { %2353 = vmatprep.mubr.msk.f32.mxu1 %vm527_vm0, %v491_v14 }
 0x194   :  { %v1041_v18 = vpop.f32.mrf.mxu0 }
 0x195   :  { %1632 = vxpose.xlu0.b32.cont [13/16] (narrow) %v1041_v18, 8  ;;  %v493_v21 = vpop.trf.xlu0 }
 0x196   :  { %2354 = vmatmul.mubr.msk.f32.gmra.mxu1 %vm527_vm0, %v492_v16 }
 0x197   :  { %2356 = vmatprep.mubr.msk.f32.mxu1 %vm527_vm0, %v493_v21 }
 0x199   :  { %1633 = vxpose.xlu0.b32.cont [14/16] (narrow) %v2211_v60, 8  ;;  %v494_v61 = vpop.trf.xlu0 }
 0x19a   :  { %v2214_v44 = vpop.f32.mrf.mxu0  ;;  %2357 = vmatmul.mubr.msk.f32.gmra.mxu1 %vm527_vm0, %v494_v61 }
 0x19b   :  { %v511_v63 = vpop.trf.xlu1 }
 0x19c   :  { %v1051_v25 = vpop.f32.mrf.mxu0  ;;  %2359 = vmatprep.mubr.msk.f32.mxu1 %vm527_vm0, %v511_v63 }
 0x19d   :  { %1634 = vxpose.xlu0.b32.cont [15/16] (narrow) %v1051_v25, 8 }
 0x19e   :  { %v2217_v34 = vpop.f32.mrf.mxu0 }
 0x19f   :  { %v512_v0 = vpop.trf.xlu1 }
 0x1a0   :  { %v1061_v1 = vpop.f32.mrf.mxu0  ;;  %2360 = vmatmul.mubr.msk.f32.gmra.mxu1 %vm527_vm0, %v512_v0 }
 0x1a1   :  { %1652 = vxpose.xlu1.b32.start [1/16] (narrow) %v1061_v1, 8  ;;  %1635 = vxpose.xlu0.b32.end [16/16] (narrow) %v2214_v44, 8 }
 0x1a2   :  { %v2220_v3 = vpop.f32.mrf.mxu0 }
 0x1a3   :  { %v513_v2 = vpop.trf.xlu1 }
 0x1a4   :  { %2362 = vmatprep.mubr.msk.f32.mxu1 %vm527_vm0, %v513_v2  ;;  %v1071_v4 = vpop.f32.mrf.mxu0 }
 0x1a5   :  { %1653 = vxpose.xlu1.b32.cont [2/16] (narrow) %v2217_v34, 8 }
 0x1a6   :  { %v2223_v8 = vpop.f32.mrf.mxu0 }
 0x1a7   :  { %v514_v50 = vpop.trf.xlu1 }
 0x1a8   :  { %2363 = vmatmul.mubr.msk.f32.gmra.mxu1 %vm527_vm0, %v514_v50  ;;  %v1081_v13 = vpop.f32.mrf.mxu0 }
 0x1a9   :  { %1654 = vxpose.xlu1.b32.cont [3/16] (narrow) %v1071_v4, 8 }
 0x1aa   :  { %v2226_v15 = vpop.f32.mrf.mxu0 }
 0x1ab   :  { %v515_v5 = vpop.trf.xlu1 }
 0x1ac   :  { %2365 = vmatprep.mubr.msk.f32.mxu1 %vm527_vm0, %v515_v5  ;;  %v1091_v19 = vpop.f32.mrf.mxu0  ;;  %v134_v5 = vmul.f32 %v2520_v24, %v2520_v24 }
 0x1ad   :  { %1655 = vxpose.xlu1.b32.cont [4/16] (narrow) %v2220_v3, 8 }
 0x1ae   :  { %v2229_v27 = vpop.f32.mrf.mxu0 }
 0x1af   :  { %v516_v10 = vpop.trf.xlu1 }
 0x1b0   :  { %2366 = vmatmul.mubr.msk.f32.gmra.mxu1 %vm527_vm0, %v516_v10  ;;  %v1101_v36 = vpop.f32.mrf.mxu0 }
 0x1b1   :  { %1656 = vxpose.xlu1.b32.cont [5/16] (narrow) %v1081_v13, 8 }
 0x1b2   :  { %v2232_v45 = vpop.f32.mrf.mxu0 }
 0x1b3   :  { %v517_v57 = vpop.trf.xlu1 }
 0x1b4   :  { %2368 = vmatprep.mubr.msk.f32.mxu1 %vm527_vm0, %v517_v57  ;;  %v1111_v47 = vpop.f32.mrf.mxu0 }
 0x1b5   :  { %1657 = vxpose.xlu1.b32.cont [6/16] (narrow) %v2223_v8, 8  ;;  %v135_v8 = vmul.f32 %v2527_v28, %v2527_v28 }
 0x1b6   :  { %v2235_v49 = vpop.f32.mrf.mxu0 }
 0x1b7   :  { %v518_v17 = vpop.trf.xlu1 }
 0x1b8   :  { %2369 = vmatmul.mubr.msk.f32.gmra.mxu1 %vm527_vm0, %v518_v17  ;;  %v1121_v53 = vpop.f32.mrf.mxu0 }
 0x1b9   :  { %1658 = vxpose.xlu1.b32.cont [7/16] (narrow) %v1091_v19, 8  ;;  %v170_v19 = vadd.f32 %v135_v8, %v134_v5 }
 0x1ba   :  { %v2238_v11 = vpop.f32.mrf.mxu0 }
 0x1bb   :  { %v519_v23 = vpop.trf.xlu1 }
 0x1bc   :  { %2371 = vmatprep.mubr.msk.f32.mxu1 %vm527_vm0, %v519_v23  ;;  %v1131_v55 = vpop.f32.mrf.mxu0 }
 0x1bd   :  { %1659 = vxpose.xlu1.b32.cont [8/16] (narrow) %v2226_v15, 8 }
 0x1be   :  { %v2241_v3 = vpop.f32.mrf.mxu0 }
 0x1bf   :  { %v520_v32 = vpop.trf.xlu1 }
 0x1c0   :  { %2372 = vmatmul.mubr.msk.f32.gmra.mxu1 %vm527_vm0, %v520_v32  ;;  %v1141_v57 = vpop.f32.mrf.mxu0  ;;  %v171_v32 = vrot.slane %v170_v19, 4 }
 0x1c1   :  { %1660 = vxpose.xlu1.b32.cont [9/16] (narrow) %v1101_v36, 8 }
 0x1c2   :  { %v2244_v23 = vpop.f32.mrf.mxu0  ;;  %v172_v28 = vadd.f32 %v171_v32, %v170_v19 }
 0x1c3   :  { %v521_v43 = vpop.trf.xlu1 }
 0x1c4   :  { %2374 = vmatprep.mubr.msk.f32.mxu1 %vm527_vm0, %v521_v43  ;;  %v1151_v24 = vpop.f32.mrf.mxu0 }
 0x1c5   :  { %1661 = vxpose.xlu1.b32.cont [10/16] (narrow) %v2229_v27, 8 }
 0x1c7   :  { %v522_v46 = vpop.trf.xlu1 }
 0x1c8   :  { %2375 = vmatmul.mubr.msk.f32.gmra.mxu1 %vm527_vm0, %v522_v46 }
 0x1c9   :  { %1662 = vxpose.xlu1.b32.cont [11/16] (narrow) %v1111_v47, 8 }
 0x1cb   :  { %v523_v48 = vpop.trf.xlu1 }
 0x1cc   :  { %2377 = vmatprep.mubr.msk.f32.mxu1 %vm527_vm0, %v523_v48 }
 0x1cd   :  { %1663 = vxpose.xlu1.b32.cont [12/16] (narrow) %v2232_v45, 8 }
 0x1cf   :  { %v524_v58 = vpop.trf.xlu1 }
 0x1d0   :  { %2378 = vmatmul.mubr.msk.f32.gmra.mxu1 %vm527_vm0, %v524_v58 }
 0x1d1   :  { %1664 = vxpose.xlu1.b32.cont [13/16] (narrow) %v1121_v53, 8 }
 0x1d3   :  { %v525_v51 = vpop.trf.xlu1 }
 0x1d4   :  { %2380 = vmatprep.mubr.msk.f32.mxu1 %vm527_vm0, %v525_v51 }
 0x1d5   :  { %1665 = vxpose.xlu1.b32.cont [14/16] (narrow) %v2235_v49, 8 }
 0x1d7   :  { %v526_v54 = vpop.trf.xlu1 }
 0x1d8   :  { %2381 = vmatmul.mubr.msk.f32.gmra.mxu1 %vm527_vm0, %v526_v54 }
 0x1d9   :  { %1666 = vxpose.xlu1.b32.cont [15/16] (narrow) %v1131_v55, 8 }
 0x1dd   :  { %1667 = vxpose.xlu1.b32.end [16/16] (narrow) %v2238_v11, 8 }
 0x1e1   :  { %v1636_v52 = vpop.trf.xlu0 }
 0x1e2   :  { %v1890_v56 = vadd.f32 %v2780_v7, %v1636_v52  ;;  %v2289_v59 = vpop.f32.mrf.mxu1 }
 0x1e4   :  { %v1898_v14 = vadd.f32 %v1890_v56, %v2484_v35  ;;  %v1301_v16 = vpop.f32.mrf.mxu1 }
 0x1e5   :  { %1748 = vxpose.xlu0.b32.start [1/16] (narrow) %v1301_v16, 8 }
 0x1e6   :  { %1906 = vst [vmem:[#allocation5] sm:$0xff] %v1898_v14 }
 0x1e9   :  { %1749 = vxpose.xlu0.b32.cont [2/16] (narrow) %v2289_v59, 8 }
 0x1ea   :  { %v2292_v60 = vpop.f32.mrf.mxu1 }
 0x1ec   :  { %v1311_v18 = vpop.f32.mrf.mxu1 }
 0x1ed   :  { %1750 = vxpose.xlu0.b32.cont [3/16] (narrow) %v1311_v18, 8 }
 0x1f1   :  { %1751 = vxpose.xlu0.b32.cont [4/16] (narrow) %v2292_v60, 8 }
 0x1f2   :  { %v2295_v21 = vpop.f32.mrf.mxu1 }
 0x1f4   :  { %v1321_v61 = vpop.f32.mrf.mxu1 }
 0x1f5   :  { %1752 = vxpose.xlu0.b32.cont [5/16] (narrow) %v1321_v61, 8 }
 0x1f9   :  { %1753 = vxpose.xlu0.b32.cont [6/16] (narrow) %v2295_v21, 8 }
 0x1fa   :  { %v2298_v44 = vpop.f32.mrf.mxu1 }
 0x1fc   :  { %v1331_v63 = vpop.f32.mrf.mxu1 }
 0x1fd   :  { %1754 = vxpose.xlu0.b32.cont [7/16] (narrow) %v1331_v63, 8 }
 0x201   :  { %1755 = vxpose.xlu0.b32.cont [8/16] (narrow) %v2298_v44, 8 }
 0x202   :  { %v2301_v7 = vpop.f32.mrf.mxu1 }
 0x204   :  { %v1341_v25 = vpop.f32.mrf.mxu1 }
 0x205   :  { %1756 = vxpose.xlu0.b32.cont [9/16] (narrow) %v1341_v25, 8 }
 0x209   :  { %1757 = vxpose.xlu0.b32.cont [10/16] (narrow) %v2301_v7, 8 }
 0x20a   :  { %v2304_v35 = vpop.f32.mrf.mxu1 }
 0x20c   :  { %v1351_v34 = vpop.f32.mrf.mxu1 }
 0x20d   :  { %1758 = vxpose.xlu0.b32.cont [11/16] (narrow) %v1351_v34, 8 }
 0x211   :  { %1759 = vxpose.xlu0.b32.cont [12/16] (narrow) %v2304_v35, 8 }
 0x212   :  { %v2307_v0 = vpop.f32.mrf.mxu1 }
 0x214   :  { %v1361_v1 = vpop.f32.mrf.mxu1 }
 0x215   :  { %1760 = vxpose.xlu0.b32.cont [13/16] (narrow) %v1361_v1, 8 }
 0x219   :  { %1761 = vxpose.xlu0.b32.cont [14/16] (narrow) %v2307_v0, 8 }
 0x21a   :  { %v2310_v2 = vpop.f32.mrf.mxu1 }
 0x21c   :  { %v1371_v50 = vpop.f32.mrf.mxu1 }
 0x21d   :  { %v1668_v4 = vpop.trf.xlu1  ;;  %1762 = vxpose.xlu0.b32.cont [15/16] (narrow) %v1371_v50, 8  ;;  %v136_v50 = vmul.f32 %v2523_v26, %v2523_v26 }
 0x21e   :  { %v1891_v10 = vadd.f32 %v2783_v31, %v1668_v4  ;;  %v2313_v13 = vpop.f32.mrf.mxu1  ;;  %v2247_v31 = vpop.f32.mrf.mxu0  ;;  %v137_v4 = vmul.f32 %v2533_v30, %v2533_v30 }
 0x220   :  { %v1899_v15 = vadd.f32 %v1891_v10, %v2489_v38  ;;  %v1381_v17 = vpop.f32.mrf.mxu1  ;;  %v173_v38 = vrot.slane %v172_v28, 2  ;;  %v1161_v45 = vpop.f32.mrf.mxu0 }
 0x221   :  { %1763 = vxpose.xlu0.b32.end [16/16] (narrow) %v2310_v2, 8  ;;  %1780 = vxpose.xlu1.b32.start [1/16] (narrow) %v1381_v17, 8 }
 0x222   :  { %1907 = vst [vmem:[#allocation5 + $0x8] sm:$0xff] %v1899_v15  ;;  %v2316_v27 = vpop.f32.mrf.mxu1  ;;  %v174_v47 = vadd.f32 %v173_v38, %v172_v28  ;;  %v2250_v48 = vpop.f32.mrf.mxu0 }
 0x224   :  { %v1391_v36 = vpop.f32.mrf.mxu1  ;;  %v175_v58 = vrot.slane %v174_v47, 1  ;;  %v1171_v53 = vpop.f32.mrf.mxu0 }
 0x225   :  { %1684 = vxpose.xlu0.b32.start [1/16] (narrow) %v1141_v57, 8  ;;  %1781 = vxpose.xlu1.b32.cont [2/16] (narrow) %v2313_v13, 8  ;;  %v177_v13 = vadd.f32 %v137_v4, %v136_v50 }
 0x226   :  { %v2319_v43 = vpop.f32.mrf.mxu1  ;;  %v176_v11 = vadd.f32 %v175_v58, %v174_v47  ;;  %v2253_v54 = vpop.f32.mrf.mxu0 }
 0x228   :  { %v1401_v46 = vpop.f32.mrf.mxu1  ;;  %v202_v52 = vmul.f32 0.0625, %v176_v11  ;;  %v1181_v56 = vpop.f32.mrf.mxu0 }
 0x229   :  { %1685 = vxpose.xlu0.b32.cont [2/16] (narrow) %v2241_v3, 8  ;;  %1782 = vxpose.xlu1.b32.cont [3/16] (narrow) %v1391_v36, 8 }
 0x22a   :  { %v2322_v49 = vpop.f32.mrf.mxu1  ;;  %v210_v14 = vadd.f32 1e-05, %v202_v52  ;;  %v2256_v16 = vpop.f32.mrf.mxu0 }
 0x22c   :  { %v1411_v51 = vpop.f32.mrf.mxu1  ;;  %2403 = vrsqrt.f32 %v210_v14  ;;  %v1191_v18 = vpop.f32.mrf.mxu0  ;;  %vm244_vm11 = vcmp.eq.f32.partialorder %v210_v14, inf  ;;  %v247_v3 = vand.u32 2147483648, %v210_v14  ;;  %vm246_vm12 = vcmp.eq.f32.partialorder %v210_v14, 0.0 }
 0x22d   :  { %1686 = vxpose.xlu0.b32.cont [3/16] (narrow) %v1151_v24, 8  ;;  %1783 = vxpose.xlu1.b32.cont [4/16] (narrow) %v2316_v27, 8 }
 0x22e   :  { %v2325_v55 = vpop.f32.mrf.mxu1  ;;  %v2259_v61 = vpop.f32.mrf.mxu0 }
 0x230   :  { %v1421_v59 = vpop.f32.mrf.mxu1  ;;  %v1201_v63 = vpop.f32.mrf.mxu0 }
 0x231   :  { %1687 = vxpose.xlu0.b32.cont [4/16] (narrow) %v2244_v23, 8  ;;  %1784 = vxpose.xlu1.b32.cont [5/16] (narrow) %v1401_v46, 8  ;;  %v178_v23 = vrot.slane %v177_v13, 4 }
 0x232   :  { %v2328_v60 = vpop.f32.mrf.mxu1  ;;  %v2262_v35 = vpop.f32.mrf.mxu0 }
 0x233   :  { %v179_v24 = vadd.f32 %v178_v23, %v177_v13 }
 0x234   :  { %v1431_v21 = vpop.f32.mrf.mxu1  ;;  %v1211_v1 = vpop.f32.mrf.mxu0 }
 0x235   :  { %1688 = vxpose.xlu0.b32.cont [5/16] (narrow) %v1161_v45, 8  ;;  %1785 = vxpose.xlu1.b32.cont [6/16] (narrow) %v2319_v43, 8 }
 0x236   :  { %v2331_v44 = vpop.f32.mrf.mxu1  ;;  %v2265_v8 = vpop.f32.mrf.mxu0 }
 0x238   :  { %v1441_v7 = vpop.f32.mrf.mxu1  ;;  %v1221_v57 = vpop.f32.mrf.mxu0 }
 0x239   :  { %1689 = vxpose.xlu0.b32.cont [6/16] (narrow) %v2247_v31, 8  ;;  %1786 = vxpose.xlu1.b32.cont [7/16] (narrow) %v1411_v51, 8  ;;  %v2404_v25 = vpop.eup %2403  ;;  %v180_v31 = vrot.slane %v179_v24, 2 }
 0x23a   :  { %v2334_v34 = vpop.f32.mrf.mxu1  ;;  %v243_v0 = vmul.f32 %v2404_v25, %v210_v14  ;;  %v2268_v26 = vpop.f32.mrf.mxu0 }
 0x23b   :  { %v181_v45 = vadd.f32 %v180_v31, %v179_v24 }
 0x23c   :  { %v1451_v2 = vpop.f32.mrf.mxu1  ;;  %v245_v5 = vsel %vm244_vm11, %v210_v14, %v243_v0  ;;  %v1231_v36 = vpop.f32.mrf.mxu0 }
 0x23d   :  { %1690 = vxpose.xlu0.b32.cont [7/16] (narrow) %v1171_v53, 8  ;;  %1787 = vxpose.xlu1.b32.cont [8/16] (narrow) %v2322_v49, 8  ;;  %v248_v10 = vsel %vm246_vm12, %v247_v3, %v245_v5 }
 0x23e   :  { %v2337_v15 = vpop.f32.mrf.mxu1  ;;  %v1886_v17 = vmul.f32 %v2775_v37, %v248_v10  ;;  %v2271_v43 = vpop.f32.mrf.mxu0 }
 0x240   :  { %v1461_v30 = vpop.f32.mrf.mxu1  ;;  %v1241_v46 = vpop.f32.mrf.mxu0 }
 0x241   :  { %1691 = vxpose.xlu0.b32.cont [8/16] (narrow) %v2250_v48, 8  ;;  %1788 = vxpose.xlu1.b32.cont [9/16] (narrow) %v1421_v59, 8 }
 0x242   :  { %v2340_v28 = vpop.f32.mrf.mxu1  ;;  %v2274_v48 = vpop.f32.mrf.mxu0 }
 0x244   :  { %v1471_v38 = vpop.f32.mrf.mxu1  ;;  %v1251_v53 = vpop.f32.mrf.mxu0 }
 0x245   :  { %1692 = vxpose.xlu0.b32.cont [9/16] (narrow) %v1181_v56, 8  ;;  %1789 = vxpose.xlu1.b32.cont [10/16] (narrow) %v2325_v55, 8 }
 0x246   :  { %v2343_v47 = vpop.f32.mrf.mxu1 }
 0x248   :  { %v1481_v49 = vpop.f32.mrf.mxu1 }
 0x249   :  { %1693 = vxpose.xlu0.b32.cont [10/16] (narrow) %v2253_v54, 8  ;;  %1790 = vxpose.xlu1.b32.cont [11/16] (narrow) %v1431_v21, 8  ;;  %v2277_v54 = vpop.f32.mrf.mxu0 }
 0x24a   :  { %v2346_v51 = vpop.f32.mrf.mxu1 }
 0x24b   :  { %v1261_v56 = vpop.f32.mrf.mxu0 }
 0x24c   :  { %v1491_v55 = vpop.f32.mrf.mxu1 }
 0x24d   :  { %1694 = vxpose.xlu0.b32.cont [11/16] (narrow) %v1191_v18, 8  ;;  %1791 = vxpose.xlu1.b32.cont [12/16] (narrow) %v2328_v60, 8  ;;  %v2280_v14 = vpop.f32.mrf.mxu0 }
 0x24e   :  { %v2349_v59 = vpop.f32.mrf.mxu1 }
 0x24f   :  { %v1271_v60 = vpop.f32.mrf.mxu0 }
 0x251   :  { %1695 = vxpose.xlu0.b32.cont [12/16] (narrow) %v2256_v16, 8  ;;  %1792 = vxpose.xlu1.b32.cont [13/16] (narrow) %v1441_v7, 8  ;;  %v1501_v16 = vpop.f32.mrf.mxu1  ;;  %v2283_v21 = vpop.f32.mrf.mxu0 }
 0x253   :  { %v2352_v18 = vpop.f32.mrf.mxu1  ;;  %v1281_v7 = vpop.f32.mrf.mxu0 }
 0x255   :  { %1696 = vxpose.xlu0.b32.cont [13/16] (narrow) %v1201_v63, 8  ;;  %1793 = vxpose.xlu1.b32.cont [14/16] (narrow) %v2331_v44, 8 }
 0x259   :  { %1697 = vxpose.xlu0.b32.cont [14/16] (narrow) %v2259_v61, 8  ;;  %1794 = vxpose.xlu1.b32.cont [15/16] (narrow) %v1451_v2, 8  ;;  %v1511_v61 = vpop.f32.mrf.mxu1 }
 0x25b   :  { %v2355_v44 = vpop.f32.mrf.mxu1 }
 0x25d   :  { %1698 = vxpose.xlu0.b32.cont [15/16] (narrow) %v1211_v1, 8  ;;  %1795 = vxpose.xlu1.b32.end [16/16] (narrow) %v2334_v34, 8  ;;  %v1521_v25 = vpop.f32.mrf.mxu1  ;;  %v2286_v34 = vpop.f32.mrf.mxu0 }
 0x25f   :  { %v2358_v0 = vpop.f32.mrf.mxu1  ;;  %v1291_v3 = vpop.f32.mrf.mxu0 }
 0x261   :  { %1699 = vxpose.xlu0.b32.end [16/16] (narrow) %v2262_v35, 8  ;;  %1716 = vxpose.xlu1.b32.start [1/16] (narrow) %v1221_v57, 8  ;;  %v1764_v19 = vpop.trf.xlu0  ;;  %v1531_v50 = vpop.f32.mrf.mxu1 }
 0x262   :  { %v1894_v27 = vadd.f32 %v1886_v17, %v1764_v19 }
 0x263   :  { %v2361_v5 = vpop.f32.mrf.mxu1 }
 0x264   :  { %v1902_v32 = vadd.f32 %v1894_v27, %v2515_v20  ;;  %v182_v20 = vrot.slane %v181_v45, 1 }
 0x265   :  { %1717 = vxpose.xlu1.b32.cont [2/16] (narrow) %v2265_v8, 8  ;;  %1812 = vxpose.xlu0.b32.start [1/16] (narrow) %v1461_v30, 8 }
 0x266   :  { %1910 = vst [vmem:[#allocation5 + $0x20] sm:$0xff] %v1902_v32  ;;  %v183_v58 = vadd.f32 %v182_v20, %v181_v45 }
 0x268   :  { %v203_v11 = vmul.f32 0.0625, %v183_v58 }
 0x269   :  { %1718 = vxpose.xlu1.b32.cont [3/16] (narrow) %v1231_v36, 8  ;;  %1813 = vxpose.xlu0.b32.cont [2/16] (narrow) %v2337_v15, 8  ;;  %v1541_v15 = vpop.f32.mrf.mxu1 }
 0x26a   :  { %v211_v52 = vadd.f32 1e-05, %v203_v11 }
 0x26b   :  { %v2364_v27 = vpop.f32.mrf.mxu1 }
 0x26c   :  { %2405 = vrsqrt.f32 %v211_v52  ;;  %vm251_vm13 = vcmp.eq.f32.partialorder %v211_v52, inf  ;;  %v254_v1 = vand.u32 2147483648, %v211_v52  ;;  %vm253_vm14 = vcmp.eq.f32.partialorder %v211_v52, 0.0 }
 0x26d   :  { %1719 = vxpose.xlu1.b32.cont [4/16] (narrow) %v2268_v26, 8  ;;  %1814 = vxpose.xlu0.b32.cont [3/16] (narrow) %v1471_v38, 8  ;;  %v1551_v26 = vpop.f32.mrf.mxu1 }
 0x270   :  { %v2367_v32 = vpop.f32.mrf.mxu1 }
 0x271   :  { %1720 = vxpose.xlu1.b32.cont [5/16] (narrow) %v1241_v46, 8  ;;  %1815 = vxpose.xlu0.b32.cont [4/16] (narrow) %v2340_v28, 8  ;;  %v140_v46 = vmul.f32 %v2614_v9, %v2614_v9 }
 0x272   :  { %v1561_v30 = vpop.f32.mrf.mxu1 }
 0x275   :  { %1721 = vxpose.xlu1.b32.cont [6/16] (narrow) %v2271_v43, 8  ;;  %1816 = vxpose.xlu0.b32.cont [5/16] (narrow) %v1481_v49, 8 }
 0x278   :  { %v2370_v24 = vpop.f32.mrf.mxu1 }
 0x279   :  { %1722 = vxpose.xlu1.b32.cont [7/16] (narrow) %v1251_v53, 8  ;;  %1817 = vxpose.xlu0.b32.cont [6/16] (narrow) %v2343_v47, 8  ;;  %v2406_v63 = vpop.eup %2405  ;;  %v141_v47 = vmul.f32 %v2625_v12, %v2625_v12 }
 0x27a   :  { %v250_v35 = vmul.f32 %v2406_v63, %v211_v52 }
 0x27c   :  { %v252_v2 = vsel %vm251_vm13, %v211_v52, %v250_v35 }
 0x27d   :  { %1723 = vxpose.xlu1.b32.cont [8/16] (narrow) %v2274_v48, 8  ;;  %1818 = vxpose.xlu0.b32.cont [7/16] (narrow) %v1491_v55, 8  ;;  %v255_v4 = vsel %vm253_vm14, %v254_v1, %v252_v2  ;;  %v191_v48 = vadd.f32 %v141_v47, %v140_v46 }
 0x27e   :  { %v1887_v8 = vmul.f32 %v2775_v37, %v255_v4 }
 0x27f   :  { %v192_v53 = vrot.slane %v191_v48, 4 }
 0x281   :  { %1724 = vxpose.xlu1.b32.cont [9/16] (narrow) %v1261_v56, 8  ;;  %1819 = vxpose.xlu0.b32.cont [8/16] (narrow) %v2346_v51, 8 }
 0x285   :  { %1725 = vxpose.xlu1.b32.cont [10/16] (narrow) %v2277_v54, 8  ;;  %1820 = vxpose.xlu0.b32.cont [9/16] (narrow) %v1501_v16, 8  ;;  %v193_v54 = vadd.f32 %v192_v53, %v191_v48 }
 0x287   :  { %v194_v9 = vrot.slane %v193_v54, 2 }
 0x289   :  { %1726 = vxpose.xlu1.b32.cont [11/16] (narrow) %v1271_v60, 8  ;;  %1821 = vxpose.xlu0.b32.cont [10/16] (narrow) %v2349_v59, 8  ;;  %v195_v55 = vadd.f32 %v194_v9, %v193_v54 }
 0x28b   :  { %v196_v52 = vrot.slane %v195_v55, 1 }
 0x28d   :  { %1727 = vxpose.xlu1.b32.cont [12/16] (narrow) %v2280_v14, 8  ;;  %1822 = vxpose.xlu0.b32.cont [11/16] (narrow) %v1511_v61, 8  ;;  %v197_v12 = vadd.f32 %v196_v52, %v195_v55 }
 0x28f   :  { %v205_v56 = vmul.f32 0.0625, %v197_v12 }
 0x291   :  { %1728 = vxpose.xlu1.b32.cont [13/16] (narrow) %v1281_v7, 8  ;;  %1823 = vxpose.xlu0.b32.cont [12/16] (narrow) %v2352_v18, 8  ;;  %v213_v59 = vadd.f32 1e-05, %v205_v56 }
 0x293   :  { %2407 = vrsqrt.f32 %v213_v59  ;;  %vm265_vm15 = vcmp.eq.f32.partialorder %v213_v59, inf  ;;  %vm267_vm0 = vcmp.eq.f32.partialorder %v213_v59, 0.0 }
 0x295   :  { %1729 = vxpose.xlu1.b32.cont [14/16] (narrow) %v2283_v21, 8  ;;  %1824 = vxpose.xlu0.b32.cont [13/16] (narrow) %v1521_v25, 8 }
 0x299   :  { %1730 = vxpose.xlu1.b32.cont [15/16] (narrow) %v1291_v3, 8  ;;  %1825 = vxpose.xlu0.b32.cont [14/16] (narrow) %v2355_v44, 8 }
 0x29d   :  { %1731 = vxpose.xlu1.b32.end [16/16] (narrow) %v2286_v34, 8  ;;  %v1796_v10 = vpop.trf.xlu1  ;;  %1826 = vxpose.xlu0.b32.cont [15/16] (narrow) %v1531_v50, 8 }
 0x29e   :  { %v1895_v13 = vadd.f32 %v1887_v8, %v1796_v10 }
 0x2a0   :  { %v1903_v57 = vadd.f32 %v1895_v13, %v2517_v22  ;;  %v1571_v22 = vpop.f32.mrf.mxu1  ;;  %v2408_v14 = vpop.eup %2407 }
 0x2a1   :  { %1827 = vxpose.xlu0.b32.end [16/16] (narrow) %v2358_v0, 8  ;;  %1844 = vxpose.xlu1.b32.start [1/16] (narrow) %v1541_v15, 8  ;;  %v1700_v17 = vpop.trf.xlu0 }
 0x2a2   :  { %1911 = vst [vmem:[#allocation5 + $0x28] sm:$0xff] %v1903_v57  ;;  %v1892_v19 = vadd.f32 %v2788_v33, %v1700_v17  ;;  %v2373_v36 = vpop.f32.mrf.mxu1 }
 0x2a4   :  { %v1900_v23 = vadd.f32 %v1892_v19, %v2491_v39  ;;  %v1581_v28 = vpop.f32.mrf.mxu1 }
 0x2a5   :  { %1845 = vxpose.xlu1.b32.cont [2/16] (narrow) %v2361_v5, 8 }
 0x2a6   :  { %1908 = vst [vmem:[#allocation5 + $0x10] sm:$0xff] %v1900_v23  ;;  %v2376_v33 = vpop.f32.mrf.mxu1 }
 0x2a8   :  { %v1591_v39 = vpop.f32.mrf.mxu1 }
 0x2a9   :  { %1846 = vxpose.xlu1.b32.cont [3/16] (narrow) %v1551_v26, 8 }
 0x2aa   :  { %v2379_v31 = vpop.f32.mrf.mxu1 }
 0x2ac   :  { %v1601_v43 = vpop.f32.mrf.mxu1 }
 0x2ad   :  { %1847 = vxpose.xlu1.b32.cont [4/16] (narrow) %v2364_v27, 8 }
 0x2ae   :  { %v2382_v38 = vpop.f32.mrf.mxu1 }
 0x2b0   :  { %v1611_v45 = vpop.f32.mrf.mxu1 }
 0x2b1   :  { %1848 = vxpose.xlu1.b32.cont [5/16] (narrow) %v1561_v30, 8 }
 0x2b5   :  { %1849 = vxpose.xlu1.b32.cont [6/16] (narrow) %v2367_v32, 8 }
 0x2b9   :  { %1850 = vxpose.xlu1.b32.cont [7/16] (narrow) %v1571_v22, 8 }
 0x2bd   :  { %1851 = vxpose.xlu1.b32.cont [8/16] (narrow) %v2370_v24, 8 }
 0x2c1   :  { %1852 = vxpose.xlu1.b32.cont [9/16] (narrow) %v1581_v28, 8 }
 0x2c5   :  { %1853 = vxpose.xlu1.b32.cont [10/16] (narrow) %v2373_v36, 8 }
 0x2c9   :  { %1854 = vxpose.xlu1.b32.cont [11/16] (narrow) %v1591_v39, 8 }
 0x2ca   :  { %2392 = vset.pattern.permute.xlu0 %v2456_v62 }
 0x2cd   :  { %1855 = vxpose.xlu1.b32.cont [12/16] (narrow) %v2376_v33, 8 }
 0x2d1   :  { %1856 = vxpose.xlu1.b32.cont [13/16] (narrow) %v1601_v43, 8 }
 0x2d5   :  { %1857 = vxpose.xlu1.b32.cont [14/16] (narrow) %v2379_v31, 8 }
 0x2d9   :  { %1858 = vxpose.xlu1.b32.cont [15/16] (narrow) %v1611_v45, 8 }
 0x2dd   :  { %v1732_v20 = vpop.trf.xlu1  ;;  %1859 = vxpose.xlu1.b32.end [16/16] (narrow) %v2382_v38, 8 }
 0x2de   :  { %v1893_v49 = vadd.f32 %v2791_v40, %v1732_v20  ;;  %v264_v40 = vmul.f32 %v2408_v14, %v213_v59 }
 0x2e0   :  { %v1901_v62 = vadd.f32 %v1893_v49, %v2497_v42  ;;  %v268_v42 = vand.u32 2147483648, %v213_v59  ;;  %v266_v16 = vsel %vm265_vm15, %v213_v59, %v264_v40 }
 0x2e1   :  { %v1828_v58 = vpop.trf.xlu0 }
 0x2e2   :  { %1909 = vst [vmem:[#allocation5 + $0x18] sm:$0xff] %v1901_v62  ;;  %v1896_v51 = vadd.f32 %v2794_v41, %v1828_v58  ;;  %v269_v60 = vsel %vm267_vm0, %v268_v42, %v266_v16 }
 0x2e3   :  { %v1889_v41 = vmul.f32 %v2775_v37, %v269_v60 }
 0x2e4   :  { %v1904_v11 = vadd.f32 %v1896_v51, %v2529_v29 }
 0x2e6   :  { %1912 = vst [vmem:[#allocation5 + $0x30] sm:$0xff] %v1904_v11 }
 0x31d   :  { %v1860_v18 = vpop.trf.xlu1 }
 0x31e   :  { %v1897_v29 = vadd.f32 %v1889_v41, %v1860_v18 }
 0x320   :  { %v1905_v21 = vadd.f32 %v1897_v29, %v2608_v6 }
 0x322   :  { %1913 = vst [vmem:[#allocation5 + $0x38] sm:$0xff] %v1905_v21 }
 0x323   :  { %2440 = shalt.err (!%p2437_p9)
}
 0x324   :  { %1925 = dma.vmem_to_hbm [thread:$0]  %s1920_s21, 1024, %s2874_s3, [#allocation4], %s2454_s15, %s2454_s15, %s2455_s16  }
 0x325   :  { %2451 = dma.done.wait [#allocation4], 1024  }
 0x326   :  { %2452 = vsyncadd [#allocation4], 4294966272 }
 0x327   :  { %1929 = vsyncpa [#allocation3], 1 }
 0x328   :  { %1930 = vsyncpa [#allocation4], 1 }

</bundles_post_ra>
